<compile_context>
chip_gen: v7x
topology: tpu7x:2x2x1
jax: 0.10.0
libtpu: 0.0.40
codegen_flags: <defaults>
</compile_context>

<pallas_src>
import jax
import jax.numpy as jnp
from jax.experimental import pallas as pl
from jax.experimental.pallas import tpu as pltpu


def _round_up(n, m):
    return ((n + m - 1) // m) * m


def _elu(x):
    # ELU(alpha=1): x if x > 0 else exp(x) - 1.
    # Clamp the exp argument so the unselected positive branch can't overflow.
    return jnp.where(x > 0, x, jnp.exp(jnp.minimum(x, 0.0)) - 1.0)


def _make_kernel(nb_p, h1_p, h2_p, h3_p):
    """Kernel factory; packed-constant row offsets are baked in statically."""
    r_w1 = 0
    r_b1 = r_w1 + h1_p
    r_w2 = r_b1 + h1_p
    r_b2 = r_w2 + h2_p
    r_w3 = r_b2 + h2_p
    r_b3 = r_w3 + h3_p
    r_w4 = r_b3 + h3_p
    r_b4 = r_w4 + 8
    r_nb = r_b4 + 8          # negated b-values, column 0
    r_sc = r_nb + nb_p       # sigmoid ranges: col 0 = lo, col 1 = span

    def kernel(xT_ref, wb_ref, out_ref):
        xT = xT_ref[...]                                   # [nb_p, T] lane-dense

        # Static slices of the resident packed constants (zero-cost views).
        w1 = wb_ref[r_w1:r_w1 + h1_p, 0:nb_p]              # [h1_p, nb_p]
        b1 = wb_ref[r_b1:r_b1 + h1_p, 0:1]                 # [h1_p, 1]
        w2 = wb_ref[r_w2:r_w2 + h2_p, 0:h1_p]
        b2 = wb_ref[r_b2:r_b2 + h2_p, 0:1]
        w3 = wb_ref[r_w3:r_w3 + h3_p, 0:h2_p]
        b3 = wb_ref[r_b3:r_b3 + h3_p, 0:1]
        w4 = wb_ref[r_w4:r_w4 + 8, 0:h3_p]
        b4 = wb_ref[r_b4:r_b4 + 8, 0:1]
        negb = wb_ref[r_nb:r_nb + nb_p, 0:1]               # [nb_p, 1] = -b
        lo = wb_ref[r_sc:r_sc + 8, 0:1]                    # rows >= 4 are 0
        span = wb_ref[r_sc:r_sc + 8, 1:2]                  # rows >= 4 are 0

        # Encoder MLP, transposed: h^T = W^T @ h_prev^T (+ bias column).
        # Padded rows/cols stay exactly 0: zero weights/bias and ELU(0)=0.
        h = _elu(jnp.dot(w1, xT, preferred_element_type=jnp.float32) + b1)
        h = _elu(jnp.dot(w2, h, preferred_element_type=jnp.float32) + b2)
        h = _elu(jnp.dot(w3, h, preferred_element_type=jnp.float32) + b3)
        raw = jnp.dot(w4, h, preferred_element_type=jnp.float32) + b4     # [8, T]

        # Sigmoid: EUP exp + approx EUP reciprocal, refined by one VPU Newton
        # step (error ~ eps^2, negligible even after the exp(-b*Dp) blow-up).
        den = 1.0 + jnp.exp(-raw)
        inv = pl.reciprocal(den, approx=True)
        inv = inv * (2.0 - den * inv)
        p = lo + inv * span                                # [8, T]; rows>=4 = 0

        Dp = p[0:1, :]
        Dt = p[1:2, :]
        Fp = p[2:3, :]
        S0 = p[3:4, :]

        # IVIM signal model: [nb_p, 1] column of -b against [1, T] param rows.
        sig = S0 * (Fp * jnp.exp(negb * Dp) + (1.0 - Fp) * jnp.exp(negb * Dt))

        # One lane-dense output slab: X_sig^T rows, then the params rows.
        out_ref[0:nb_p, :] = sig
        out_ref[nb_p:nb_p + 8, :] = p

    return kernel


def _pack_constants(weights, b_values, nb):
    """Pack transposed weights ([out, in]), bias columns, -b column and the
    sigmoid (lo, span) columns into one zero-padded f32 buffer. All padding is
    exact (zeros), so the kernel math matches the un-padded reference."""
    nb_p = _round_up(nb, 8)
    h1 = weights["w1"].shape[1]
    h2 = weights["w2"].shape[1]
    h3 = weights["w3"].shape[1]
    h1_p, h2_p, h3_p = (_round_up(h, 8) for h in (h1, h2, h3))
    cmax = max(nb_p, h1_p, h2_p, h3_p)

    def pad2(a, rows, cols):
        a = jnp.asarray(a, jnp.float32)
        r, c = a.shape
        return jnp.pad(a, ((0, rows - r), (0, cols - c)))

    def w_t(k):   # [in, out] -> [out, in]
        return jnp.asarray(weights[k], jnp.float32).T

    def b_col(k):  # [1, out] -> [out, 1]
        return jnp.asarray(weights[k], jnp.float32).reshape(-1, 1)

    lo = jnp.array([0.005, 0.0, 0.0, 0.8], jnp.float32).reshape(4, 1)
    span = jnp.array([0.5 - 0.005, 0.005 - 0.0, 0.7 - 0.0, 1.2 - 0.8],
                     jnp.float32).reshape(4, 1)
    negb = -jnp.asarray(b_values, jnp.float32).reshape(-1, 1)

    blocks = [
        pad2(w_t("w1"), h1_p, cmax), pad2(b_col("b1"), h1_p, cmax),
        pad2(w_t("w2"), h2_p, cmax), pad2(b_col("b2"), h2_p, cmax),
        pad2(w_t("w3"), h3_p, cmax), pad2(b_col("b3"), h3_p, cmax),
        pad2(w_t("w4"), 8, cmax),    pad2(b_col("b4"), 8, cmax),
        pad2(negb, nb_p, cmax),
        pad2(jnp.concatenate([lo, span], axis=1), 8, cmax),
    ]
    packed = jnp.concatenate(blocks, axis=0)
    dims = dict(nb_p=nb_p, h1_p=h1_p, h2_p=h2_p, h3_p=h3_p, cmax=cmax)
    return packed, dims


def net_tiny_forward(x, b_values, weights, *, tile_b=8192):
    """x: [B, Nb] float32; b_values: [Nb]; weights: dict of [in,out] matrices
    and [1,out] biases. Returns (X_sig [B,Nb], Dp, Dt, Fp, S0 each [B,1])."""
    x = jnp.asarray(x, jnp.float32)
    B, nb = x.shape

    packed, d = _pack_constants(weights, b_values, nb)
    nb_p, cmax = d["nb_p"], d["cmax"]
    r_tot = packed.shape[0]
    r_out = nb_p + 8

    # Batch tile = lane extent: multiple of 128, large to amortize per-step
    # overhead, and the grid is kept to >= 2 parallel steps when the batch
    # allows it (v7x has two TensorCores that shard parallel grid steps).
    bp_min = _round_up(B, 128)
    tmax = min(_round_up(max(int(tile_b), 128), 128), bp_min)
    n_steps = -(-bp_min // tmax)
    if bp_min >= 256:
        n_steps = max(n_steps, 2)
    tile = _round_up(-(-bp_min // n_steps), 128)
    Bp = tile * n_steps

    # Present x transposed (batch on lanes); padded rows/lanes are zeros.
    xT = jnp.pad(x, ((0, Bp - B), (0, nb_p - nb))).T       # [nb_p, Bp]

    kernel = _make_kernel(nb_p, d["h1_p"], d["h2_p"], d["h3_p"])

    slab = pl.pallas_call(
        kernel,
        out_shape=jax.ShapeDtypeStruct((r_out, Bp), jnp.float32),
        grid=(n_steps,),
        in_specs=[
            # x^T: batch-tiled along lanes.
            pl.BlockSpec((nb_p, tile), lambda i: (0, i)),
            # Packed constants: resident (same block every step -> one DMA).
            pl.BlockSpec((r_tot, cmax), lambda i: (0, 0)),
        ],
        # Single merged, lane-dense output slab.
        out_specs=pl.BlockSpec((r_out, tile), lambda i: (0, i)),
        compiler_params=pltpu.CompilerParams(
            dimension_semantics=("parallel",),
            vmem_limit_bytes=32 * 1024 * 1024,
        ),
    )(xT, packed)

    # Split / transpose back to the module's output layout (layout plumbing).
    X_sig = slab[:nb, :B].T                                # [B, nb]
    Dp = slab[nb_p + 0, :B][:, None]
    Dt = slab[nb_p + 1, :B][:, None]
    Fp = slab[nb_p + 2, :B][:, None]
    S0 = slab[nb_p + 3, :B][:, None]
    return X_sig, Dp, Dt, Fp, S0


def init_params(key, n_b):
    """Deterministic init mirroring nn.Linear default (U(-1/sqrt(in), 1/sqrt(in))).
    Weights stored as [in, out] (transpose of PyTorch's [out, in])."""
    h1 = round(n_b / 2)
    h2 = max(4, round(n_b / 3))
    h3 = max(4, round(n_b / 4))
    dims = [(n_b, h1), (h1, h2), (h2, h3), (h3, 4)]
    params = {}
    for i, (fan_in, fan_out) in enumerate(dims, start=1):
        key, kw, kb = jax.random.split(key, 3)
        bound = 1.0 / (fan_in ** 0.5)
        params[f"w{i}"] = jax.random.uniform(
            kw, (fan_in, fan_out), jnp.float32, -bound, bound)
        params[f"b{i}"] = jax.random.uniform(
            kb, (1, fan_out), jnp.float32, -bound, bound)
    return params


def _ref_forward(x, b_values, w):
    """Pure-JAX reference matching the PyTorch module."""
    hp = jax.lax.Precision.HIGHEST

    def elu(v):
        return jnp.where(v > 0, v, jnp.exp(v) - 1.0)

    h = elu(jnp.dot(x, w["w1"], precision=hp) + w["b1"])
    h = elu(jnp.dot(h, w["w2"], precision=hp) + w["b2"])
    h = elu(jnp.dot(h, w["w3"], precision=hp) + w["b3"])
    params = jnp.dot(h, w["w4"], precision=hp) + w["b4"]
    sg = jax.nn.sigmoid(params)
    Dp = 0.005 + sg[:, 0:1] * (0.5 - 0.005)
    Dt = 0.0 + sg[:, 1:2] * (0.005 - 0.0)
    Fp = 0.0 + sg[:, 2:3] * (0.7 - 0.0)
    S0 = 0.8 + sg[:, 3:4] * (1.2 - 0.8)
    b = b_values.reshape(1, -1)
    X = S0 * (Fp * jnp.exp(-b * Dp) + (1 - Fp) * jnp.exp(-b * Dt))
    return X, Dp, Dt, Fp, S0


if __name__ == "__main__":
    key = jax.random.PRNGKey(0)
    Nb = 16  # 16 b-values (without b=0)
    b_values_no0 = jnp.linspace(10.0, 160.0, Nb).astype(jnp.float32)

    k_x, k_p, k_x2 = jax.random.split(key, 3)
    weights = init_params(k_p, Nb)

    # Small demo batch (single grid step, lanes padded to 128).
    B = 64
    x = jax.random.uniform(k_x, (B, Nb), jnp.float32, 0.05, 1.2)
    outs = net_tiny_forward(x, b_values_no0, weights)
    X_sig, Dp, Dt, Fp, S0 = jax.block_until_ready(outs)

    assert X_sig.shape == (B, Nb)
    assert Dp.shape == Dt.shape == Fp.shape == S0.shape == (B, 1)

    refs = _ref_forward(x, b_values_no0, weights)
    for got, want in zip((X_sig, Dp, Dt, Fp, S0), refs):
        assert jnp.allclose(got, want, rtol=1e-2, atol=1e-3), "mismatch vs reference"

    # Larger batch: exercises the multi-step grid, batch padding and the
    # >=2-parallel-steps (v7x dual TensorCore) tiling path.
    B2 = 1000
    x2 = jax.random.uniform(k_x2, (B2, Nb), jnp.float32, 0.05, 1.2)
    outs2 = net_tiny_forward(x2, b_values_no0, weights)
    X2, Dp2, Dt2, Fp2, S02 = jax.block_until_ready(outs2)
    refs2 = _ref_forward(x2, b_values_no0, weights)
    for got, want in zip((X2, Dp2, Dt2, Fp2, S02), refs2):
        assert jnp.allclose(got, want, rtol=1e-2, atol=1e-3), "mismatch vs ref (B=1000)"

    print("KERNEL_OK")
</pallas_src>

<mosaic_0001>
module attributes {stable_mosaic.version = 11 : i64} {
  func.func @kernel(%arg0: i32, %arg1: memref<16x128xf32, #tpu.memory_space<vmem>>, %arg2: memref<88x16xf32, #tpu.memory_space<vmem>>, %arg3: memref<24x128xf32, #tpu.memory_space<vmem>>) attributes {dimension_semantics = [#tpu.dimension_semantics<parallel>], iteration_bounds = array<i64: 1>, scalar_prefetch = 0 : i64, scratch_operands = 0 : i64, tpu.core_type = #tpu.core_type<tc>, window_params = [{transform_indices = @transform_0, window_bounds = array<i64: 16, 128>}, {pipeline_mode = #tpu.pipeline_mode<synchronous>, transform_indices = @transform_1, window_bounds = array<i64: 88, 16>}, {transform_indices = @transform_2, window_bounds = array<i64: 24, 128>}]} {
    %c0 = arith.constant 0 : index
    %c0_0 = arith.constant 0 : index
    %0 = vector.load %arg1[%c0, %c0_0] : memref<16x128xf32, #tpu.memory_space<vmem>>, vector<16x128xf32>
    %c0_1 = arith.constant 0 : index
    %c0_2 = arith.constant 0 : index
    %1 = vector.load %arg2[%c0_1, %c0_2] : memref<88x16xf32, #tpu.memory_space<vmem>>, vector<8x16xf32>
    %c8 = arith.constant 8 : index
    %c0_3 = arith.constant 0 : index
    %2 = vector.load %arg2[%c8, %c0_3] : memref<88x16xf32, #tpu.memory_space<vmem>>, vector<8x1xf32>
    %c16 = arith.constant 16 : index
    %c0_4 = arith.constant 0 : index
    %3 = vector.load %arg2[%c16, %c0_4] : memref<88x16xf32, #tpu.memory_space<vmem>>, vector<8x8xf32>
    %c24 = arith.constant 24 : index
    %c0_5 = arith.constant 0 : index
    %4 = vector.load %arg2[%c24, %c0_5] : memref<88x16xf32, #tpu.memory_space<vmem>>, vector<8x1xf32>
    %c32 = arith.constant 32 : index
    %c0_6 = arith.constant 0 : index
    %5 = vector.load %arg2[%c32, %c0_6] : memref<88x16xf32, #tpu.memory_space<vmem>>, vector<8x8xf32>
    %c40 = arith.constant 40 : index
    %c0_7 = arith.constant 0 : index
    %6 = vector.load %arg2[%c40, %c0_7] : memref<88x16xf32, #tpu.memory_space<vmem>>, vector<8x1xf32>
    %c48 = arith.constant 48 : index
    %c0_8 = arith.constant 0 : index
    %7 = vector.load %arg2[%c48, %c0_8] : memref<88x16xf32, #tpu.memory_space<vmem>>, vector<8x8xf32>
    %c56 = arith.constant 56 : index
    %c0_9 = arith.constant 0 : index
    %8 = vector.load %arg2[%c56, %c0_9] : memref<88x16xf32, #tpu.memory_space<vmem>>, vector<8x1xf32>
    %c64 = arith.constant 64 : index
    %c0_10 = arith.constant 0 : index
    %9 = vector.load %arg2[%c64, %c0_10] : memref<88x16xf32, #tpu.memory_space<vmem>>, vector<16x1xf32>
    %c80 = arith.constant 80 : index
    %c0_11 = arith.constant 0 : index
    %10 = vector.load %arg2[%c80, %c0_11] : memref<88x16xf32, #tpu.memory_space<vmem>>, vector<8x1xf32>
    %c80_12 = arith.constant 80 : index
    %c1 = arith.constant 1 : index
    %11 = vector.load %arg2[%c80_12, %c1] : memref<88x16xf32, #tpu.memory_space<vmem>>, vector<8x1xf32>
    %cst = arith.constant dense<0.000000e+00> : vector<8x128xf32>
    %12 = tpu.matmul %1, %0, %cst {dimension_numbers = #tpu.dot_dimension_numbers<[1], [0], [0], [1], [0, 0, 1, 1], [], []>} : vector<8x16xf32>, vector<16x128xf32>, vector<8x128xf32> -> vector<8x128xf32>
    %13 = vector.broadcast %2 : vector<8x1xf32> to vector<8x128xf32>
    %14 = arith.addf %12, %13 : vector<8x128xf32>
    %cst_13 = arith.constant 0.000000e+00 : f32
    %15 = vector.broadcast %cst_13 : f32 to vector<8x128xf32>
    %16 = arith.cmpf ogt, %14, %15 : vector<8x128xf32>
    %cst_14 = arith.constant 0.000000e+00 : f32
    %17 = vector.broadcast %cst_14 : f32 to vector<8x128xf32>
    %18 = arith.minimumf %14, %17 : vector<8x128xf32>
    %19 = math.exp %18 : vector<8x128xf32>
    %cst_15 = arith.constant 1.000000e+00 : f32
    %20 = vector.broadcast %cst_15 : f32 to vector<8x128xf32>
    %21 = arith.subf %19, %20 : vector<8x128xf32>
    %22 = arith.select %16, %14, %21 : vector<8x128xi1>, vector<8x128xf32>
    %cst_16 = arith.constant dense<0.000000e+00> : vector<8x128xf32>
    %23 = tpu.matmul %3, %22, %cst_16 {dimension_numbers = #tpu.dot_dimension_numbers<[1], [0], [0], [1], [0, 0, 1, 1], [], []>} : vector<8x8xf32>, vector<8x128xf32>, vector<8x128xf32> -> vector<8x128xf32>
    %24 = vector.broadcast %4 : vector<8x1xf32> to vector<8x128xf32>
    %25 = arith.addf %23, %24 : vector<8x128xf32>
    %cst_17 = arith.constant 0.000000e+00 : f32
    %26 = vector.broadcast %cst_17 : f32 to vector<8x128xf32>
    %27 = arith.cmpf ogt, %25, %26 : vector<8x128xf32>
    %cst_18 = arith.constant 0.000000e+00 : f32
    %28 = vector.broadcast %cst_18 : f32 to vector<8x128xf32>
    %29 = arith.minimumf %25, %28 : vector<8x128xf32>
    %30 = math.exp %29 : vector<8x128xf32>
    %cst_19 = arith.constant 1.000000e+00 : f32
    %31 = vector.broadcast %cst_19 : f32 to vector<8x128xf32>
    %32 = arith.subf %30, %31 : vector<8x128xf32>
    %33 = arith.select %27, %25, %32 : vector<8x128xi1>, vector<8x128xf32>
    %cst_20 = arith.constant dense<0.000000e+00> : vector<8x128xf32>
    %34 = tpu.matmul %5, %33, %cst_20 {dimension_numbers = #tpu.dot_dimension_numbers<[1], [0], [0], [1], [0, 0, 1, 1], [], []>} : vector<8x8xf32>, vector<8x128xf32>, vector<8x128xf32> -> vector<8x128xf32>
    %35 = vector.broadcast %6 : vector<8x1xf32> to vector<8x128xf32>
    %36 = arith.addf %34, %35 : vector<8x128xf32>
    %cst_21 = arith.constant 0.000000e+00 : f32
    %37 = vector.broadcast %cst_21 : f32 to vector<8x128xf32>
    %38 = arith.cmpf ogt, %36, %37 : vector<8x128xf32>
    %cst_22 = arith.constant 0.000000e+00 : f32
    %39 = vector.broadcast %cst_22 : f32 to vector<8x128xf32>
    %40 = arith.minimumf %36, %39 : vector<8x128xf32>
    %41 = math.exp %40 : vector<8x128xf32>
    %cst_23 = arith.constant 1.000000e+00 : f32
    %42 = vector.broadcast %cst_23 : f32 to vector<8x128xf32>
    %43 = arith.subf %41, %42 : vector<8x128xf32>
    %44 = arith.select %38, %36, %43 : vector<8x128xi1>, vector<8x128xf32>
    %cst_24 = arith.constant dense<0.000000e+00> : vector<8x128xf32>
    %45 = tpu.matmul %7, %44, %cst_24 {dimension_numbers = #tpu.dot_dimension_numbers<[1], [0], [0], [1], [0, 0, 1, 1], [], []>} : vector<8x8xf32>, vector<8x128xf32>, vector<8x128xf32> -> vector<8x128xf32>
    %46 = vector.broadcast %8 : vector<8x1xf32> to vector<8x128xf32>
    %47 = arith.addf %45, %46 : vector<8x128xf32>
    %cst_25 = arith.constant 0.000000e+00 : f32
    %48 = vector.broadcast %cst_25 : f32 to vector<8x128xf32>
    %49 = arith.subf %48, %47 : vector<8x128xf32>
    %50 = math.exp %49 : vector<8x128xf32>
    %cst_26 = arith.constant 1.000000e+00 : f32
    %51 = vector.broadcast %cst_26 : f32 to vector<8x128xf32>
    %52 = arith.addf %51, %50 : vector<8x128xf32>
    %53 = tpu.reciprocal %52 {approx = true} : vector<8x128xf32> -> vector<8x128xf32>
    %54 = arith.mulf %52, %53 : vector<8x128xf32>
    %cst_27 = arith.constant 2.000000e+00 : f32
    %55 = vector.broadcast %cst_27 : f32 to vector<8x128xf32>
    %56 = arith.subf %55, %54 : vector<8x128xf32>
    %57 = arith.mulf %53, %56 : vector<8x128xf32>
    %58 = vector.broadcast %11 : vector<8x1xf32> to vector<8x128xf32>
    %59 = arith.mulf %57, %58 : vector<8x128xf32>
    %60 = vector.broadcast %10 : vector<8x1xf32> to vector<8x128xf32>
    %61 = arith.addf %60, %59 : vector<8x128xf32>
    %62 = vector.extract_strided_slice %61 {offsets = [0, 0], sizes = [1, 128], strides = [1, 1]} : vector<8x128xf32> to vector<1x128xf32>
    %63 = vector.extract_strided_slice %61 {offsets = [1, 0], sizes = [1, 128], strides = [1, 1]} : vector<8x128xf32> to vector<1x128xf32>
    %64 = vector.extract_strided_slice %61 {offsets = [2, 0], sizes = [1, 128], strides = [1, 1]} : vector<8x128xf32> to vector<1x128xf32>
    %65 = vector.extract_strided_slice %61 {offsets = [3, 0], sizes = [1, 128], strides = [1, 1]} : vector<8x128xf32> to vector<1x128xf32>
    %66 = vector.broadcast %9 : vector<16x1xf32> to vector<16x128xf32>
    %67 = vector.broadcast %62 : vector<1x128xf32> to vector<16x128xf32>
    %68 = arith.mulf %66, %67 : vector<16x128xf32>
    %69 = math.exp %68 : vector<16x128xf32>
    %70 = vector.broadcast %64 : vector<1x128xf32> to vector<16x128xf32>
    %71 = arith.mulf %70, %69 : vector<16x128xf32>
    %cst_28 = arith.constant 1.000000e+00 : f32
    %72 = vector.broadcast %cst_28 : f32 to vector<1x128xf32>
    %73 = arith.subf %72, %64 : vector<1x128xf32>
    %74 = vector.broadcast %9 : vector<16x1xf32> to vector<16x128xf32>
    %75 = vector.broadcast %63 : vector<1x128xf32> to vector<16x128xf32>
    %76 = arith.mulf %74, %75 : vector<16x128xf32>
    %77 = math.exp %76 : vector<16x128xf32>
    %78 = vector.broadcast %73 : vector<1x128xf32> to vector<16x128xf32>
    %79 = arith.mulf %78, %77 : vector<16x128xf32>
    %80 = arith.addf %71, %79 : vector<16x128xf32>
    %81 = vector.broadcast %65 : vector<1x128xf32> to vector<16x128xf32>
    %82 = arith.mulf %81, %80 : vector<16x128xf32>
    %c0_29 = arith.constant 0 : index
    %c0_30 = arith.constant 0 : index
    %83 = vector.load %arg3[%c0_29, %c0_30] : memref<24x128xf32, #tpu.memory_space<vmem>>, vector<16x128xf32>
    tpu.vector_store %arg3[%c0_29, %c0_30], %82 {strides = array<i32>} : memref<24x128xf32, #tpu.memory_space<vmem>>, vector<16x128xf32>,
    %c16_31 = arith.constant 16 : index
    %c0_32 = arith.constant 0 : index
    %84 = vector.load %arg3[%c16_31, %c0_32] : memref<24x128xf32, #tpu.memory_space<vmem>>, vector<8x128xf32>
    tpu.vector_store %arg3[%c16_31, %c0_32], %61 {strides = array<i32>} : memref<24x128xf32, #tpu.memory_space<vmem>>, vector<8x128xf32>,
    return
  }
  func.func @transform_0(%arg0: i32) -> (i32, i32) {
    %c0_i32 = arith.constant 0 : i32
    %c0_i32_0 = arith.constant 0 : i32
    return %c0_i32, %arg0 : i32, i32
  }
  func.func @transform_1(%arg0: i32) -> (i32, i32) {
    %c0_i32 = arith.constant 0 : i32
    %c0_i32_0 = arith.constant 0 : i32
    %c0_i32_1 = arith.constant 0 : i32
    return %c0_i32, %c0_i32_0 : i32, i32
  }
  func.func @transform_2(%arg0: i32) -> (i32, i32) {
    %c0_i32 = arith.constant 0 : i32
    %c0_i32_0 = arith.constant 0 : i32
    return %c0_i32, %arg0 : i32, i32
  }
}

</mosaic_0001>

<bundles_post_ra>
// kernel: tpu_custom_call.1
= control target key start
LH: loop header
LB: loop body
LE: loop exit
PB: predicated region body
PF: predicated region fallthrough
CT: control target
= control target key end

     0   :  { %v541_v2 = vmov 0.0|0.0   ;;  %vm542_vm0 = vmmov 0   ;;  %v543_v4 = vmov 0.0   ;;  %s622_s0 = inlined_call_operand.vmem [shape: f32[16,128], index: 0, kind: input, shape index: {}]   ;;  %s623_s1 = inlined_call_operand.vmem [shape: f32[88,16], index: 1, kind: input, shape index: {}]   ;;  %s624_s2 = inlined_call_operand.hbm [shape: f32[24,128], index: 2, kind: output, shape index: {}]  }
   0x1   :  { %v12_v0 = vld [vmem:[%s622_s0] sm:$0xff]  ;;  %v13_v1 = vld [vmem:[%s622_s0 + $0x8] sm:$0xff]  ;;  %484 = vmatprep.subr.bf16.mxu0 %v541_v2  ;;  %466 = vmatprep.mubr.msk.f32.mxu0 %vm542_vm0, %v543_v4 }
   0x2   :  { %v485_v3 = vpack.c.bf16 %v13_v1, %v12_v0  ;;  %v15_v5 = vld [vmem:[%s623_s1 + $0x8] sm:$0xff] }
   0x3   :  { %7 = vsyncpa [#allocation3], 0  ;;  %v544_v6 = vmov 0   ;;  %469 = vmatprep.subr.mxu1 %v543_v4  ;;  %v14_v7 = vld [vmem:[%s623_s1] sm:$0xff]  ;;  %vm30_vm1 = vcmask 130048   ;;  %v17_v8 = vld [vmem:[%s623_s1 + $0x18] sm:$0xff]  ;;  %471 = vmatprep.mubr.msk.f32.mxu1 %vm542_vm0, %v543_v4  ;;  %v386_v53 = vlaneseq }
   0x4   :  { %495 = vset.pattern.permute.xlu0 %v544_v6  ;;  %486 = vmatpush3.bf16.msra.mxu0 %v485_v3  ;;  %v16_v17 = vld [vmem:[%s623_s1 + $0x10] sm:$0xff]  ;;  %vm115_vm3 = vcmask 64512   ;;  %v19_v19 = vld [vmem:[%s623_s1 + $0x28] sm:$0xff]  ;;  %v21_v20 = vld [vmem:[%s623_s1 + $0x38] sm:$0xff]  ;;  %v545_v33 = vmov 1  }
   0x5   :  { %27 = vperm.xlu0 %495, %v15_v5   ;;  %496 = vset.pattern.permute.xlu1 %v544_v6  ;;  %v24_v21 = vld [vmem:[%s623_s1 + $0x50] sm:$0xff]  ;;  %v22_v22 = vld [vmem:[%s623_s1 + $0x40] sm:$0xff]  ;;  %v23_v34 = vld [vmem:[%s623_s1 + $0x48] sm:$0xff]  ;;  %v387_v57 = vshrl.u32 %v386_v53, 7 }
   0x6   :  { %479 = vmatprep.subr.mxu0 %v543_v4  ;;  %197 = vperm.xlu1 %496, %v19_v19   ;;  %v18_v31 = vld [vmem:[%s623_s1 + $0x20] sm:$0xff]  ;;  %v20_v43 = vld [vmem:[%s623_s1 + $0x30] sm:$0xff]  ;;  %s546_s1 = smov [#allocation2]  }
   0x7   :  { %467 = vmatmul.mubr.msk.f32.vlgmr.msra.gmra.mrb[0].mxu0 %vm30_vm1, %v14_v7  ;;  %v388_v62 = vsub.s32 0, %v387_v57  ;;  %v405_v63 = vsub.s32 1, %v387_v57  ;;  %s435_s6 = sshll.u32 %s546_s1, 4  ;;  %s436_s6 = int_to_ptr.vmem [resolvable:$true] %s435_s6 }
   0x8   :  { %481 = vmatprep.mubr.msk.f32.mxu0 %vm542_vm0, %v543_v4  ;;  %s517_s7 = scalar_lea.vmem %s436_s6, 384  ;;  %p522_p1 = scmp.lt.s32.totalorder %s436_s6, %s436_s6 }
   0x9   :  { %112 = vperm.xlu0 %495, %v17_v8   ;;  %p518_p0 = scmp.ne.s32.totalorder %s436_s6, %s517_s7  ;;  %p523_p2 = scmp.lt.s32.totalorder %s517_s7, %s517_s7 }
   0xa   :  { %281 = vperm.xlu1 %496, %v21_v20   ;;  %v423_v20 = vsub.s32 3, %v387_v57 }
   0xb   :  { %p524_p3 = por %p523_p2, %p522_p1 }
   0xd   :  { %497 = vset.pattern.permute.xlu0 %v545_v33  ;;  %p525_p4 = pnand %p524_p3, %p518_p0 }
   0xe   :  { %372 = vperm.xlu1 %496, %v24_v21   ;;  %367 = vperm.xlu0 %497, %v24_v21  }
  0x12   :  { %378 = vperm.xlu1 %496, %v22_v22   ;;  %498 = vset.pattern.permute.xlu0 %v544_v6 }
  0x13   :  { %383 = vperm.xlu0 %498, %v23_v34  }
  0x84   :  { %v28_v9 = vpop.permute.xlu0 %27 }
  0x85   :  { %v198_v35 = vpop.permute.xlu1 %197 }
  0x88   :  { %v113_v23 = vpop.permute.xlu0 %112 }
  0x89   :  { %v282_v45 = vpop.permute.xlu1 %281 }
  0x8d   :  { %v368_v58 = vpop.permute.xlu0 %367  ;;  %v373_v60 = vpop.permute.xlu1 %372 }
  0x92   :  { %v384_v1 = vpop.permute.xlu0 %383 }
  0xda   :  { %v100_v10 = vpop.f32.mrb[0].mxu0 }
  0xdb   :  { %v101_v11 = vadd.f32 %v100_v10, %v28_v9  ;;  %v468_v12 = vpop.f32.mrb[1].mxu0 }
  0xdd   :  { %v105_v13 = vmin.f32 %v101_v11, 0.0  ;;  %vm104_vm2 = vcmp.gt.f32.partialorder %v101_v11, 0.0 }
  0xdf   :  { %v106_v14 = vmul.f32 1.442695, %v105_v13  ;;  %v398_v13 = vsub.s32 2, %v387_v57 }
  0xe1   :  { %499 = vpow2.f32 %v106_v14 }
  0xeb   :  { %v500_v15 = vpop.eup %499 }
  0xec   :  { %v447_v16 = vadd.f32 -1.0, %v500_v15 }
  0xee   :  { %v109_v18 = vsel %vm104_vm2, %v101_v11, %v447_v16 }
  0xef   :  { %470 = vmatpush3.msra.mxu1 %v109_v18 }
  0xf0   :  { %472 = vmatmul.mubr.msk.f32.vlgmr.msra.gmra.mrb[0].mxu1 %vm115_vm3, %v16_v17  ;;  %474 = vmatprep.subr.mxu1 %v543_v4 }
  0xf1   :  { %476 = vmatprep.mubr.msk.f32.mxu1 %vm542_vm0, %v543_v4  ;;  %v379_v4 = vpop.permute.xlu1 %378 }
 0x1c3   :  { %v185_v24 = vpop.f32.mrb[0].mxu1 }
 0x1c4   :  { %v186_v25 = vadd.f32 %v185_v24, %v113_v23  ;;  %v473_v26 = vpop.f32.mrb[1].mxu1 }
 0x1c6   :  { %v190_v27 = vmin.f32 %v186_v25, 0.0  ;;  %vm189_vm4 = vcmp.gt.f32.partialorder %v186_v25, 0.0 }
 0x1c8   :  { %v191_v28 = vmul.f32 1.442695, %v190_v27 }
 0x1ca   :  { %501 = vpow2.f32 %v191_v28 }
 0x1d4   :  { %v502_v29 = vpop.eup %501 }
 0x1d5   :  { %v449_v30 = vadd.f32 -1.0, %v502_v29 }
 0x1d7   :  { %v194_v32 = vsel %vm189_vm4, %v186_v25, %v449_v30 }
 0x1d8   :  { %475 = vmatpush3.msra.mxu1 %v194_v32 }
 0x1d9   :  { %477 = vmatmul.mubr.msk.f32.vlgmr.msra.gmra.mrb[2].mxu1 %vm115_vm3, %v18_v31 }
 0x2ac   :  { %v269_v36 = vpop.f32.mrb[2].mxu1 }
 0x2ad   :  { %v270_v37 = vadd.f32 %v269_v36, %v198_v35  ;;  %v478_v38 = vpop.f32.mrb[3].mxu1 }
 0x2af   :  { %v274_v39 = vmin.f32 %v270_v37, 0.0  ;;  %vm273_vm5 = vcmp.gt.f32.partialorder %v270_v37, 0.0 }
 0x2b1   :  { %v275_v40 = vmul.f32 1.442695, %v274_v39 }
 0x2b3   :  { %503 = vpow2.f32 %v275_v40 }
 0x2bd   :  { %v504_v41 = vpop.eup %503 }
 0x2be   :  { %v451_v42 = vadd.f32 -1.0, %v504_v41 }
 0x2c0   :  { %v278_v44 = vsel %vm273_vm5, %v270_v37, %v451_v42 }
 0x2c1   :  { %480 = vmatpush3.msra.mxu0 %v278_v44 }
 0x2c2   :  { %482 = vmatmul.mubr.msk.f32.vlgmr.msra.gmra.mrb[2].mxu0 %vm115_vm3, %v20_v43 }
 0x395   :  { %v353_v46 = vpop.f32.mrb[2].mxu0 }
 0x396   :  { %v354_v47 = vadd.f32 %v353_v46, %v282_v45  ;;  %v483_v48 = vpop.f32.mrb[3].mxu0 }
 0x398   :  { %v357_v49 = vsub.f32 0.0, %v354_v47 }
 0x39a   :  { %v358_v50 = vmul.f32 1.442695, %v357_v49 }
 0x39c   :  { %505 = vpow2.f32 %v358_v50 }
 0x3a6   :  { %v506_v51 = vpop.eup %505 }
 0x3a7   :  { %v360_v52 = vadd.f32 1.0, %v506_v51 }
 0x3a9   :  { %507 = vrcp.f32 %v360_v52 }
 0x3b3   :  { %v508_v54 = vpop.eup %507 }
 0x3b4   :  { %v362_v55 = vmul.f32 %v508_v54, %v360_v52 }
 0x3b6   :  { %v363_v56 = vsub.f32 2.0, %v362_v55 }
 0x3b8   :  { %v364_v59 = vmul.f32 %v508_v54, %v363_v56 }
 0x3ba   :  { %v370_v61 = vmul.f32 %v368_v58, %v364_v59 }
 0x3bc   :  { %v375_v0 = vadd.f32 %v373_v60, %v370_v61 }
 0x3be   :  { %429 = vst [vmem:[#allocation2 + $0x10] sm:$0xff] %v375_v0  ;;  %v389_v2 = vrot.slane %v375_v0, %v388_v62  ;;  %v406_v3 = vrot.slane %v375_v0, %v405_v63  ;;  %v402_v14 = vsub.f32 1.0, %v375_v0  ;;  %v399_v15 = vrot.slane %v375_v0, %v398_v13 }
 0x3bf   :  { %v424_v27 = vrot.slane %v375_v0, %v423_v20 }
 0x3c0   :  { %v390_v5 = vmul.f32 %v389_v2, %v379_v4  ;;  %v391_v6 = vmul.f32 %v389_v2, %v384_v1  ;;  %v407_v7 = vmul.f32 %v406_v3, %v379_v4  ;;  %v408_v8 = vmul.f32 %v406_v3, %v384_v1 }
 0x3c1   :  { %v416_v18 = vrot.slane %v402_v14, %v398_v13 }
 0x3c2   :  { %v392_v9 = vmul.f32 1.442695, %v390_v5  ;;  %v394_v10 = vmul.f32 1.442695, %v391_v6  ;;  %v409_v11 = vmul.f32 1.442695, %v407_v7 }
 0x3c3   :  { %v411_v12 = vmul.f32 1.442695, %v408_v8 }
 0x3c4   :  { %509 = vpow2.f32 %v392_v9 }
 0x3c5   :  { %511 = vpow2.f32 %v394_v10 }
 0x3c6   :  { %513 = vpow2.f32 %v409_v11 }
 0x3c7   :  { %515 = vpow2.f32 %v411_v12 }
 0x3ce   :  { %v510_v16 = vpop.eup %509 }
 0x3cf   :  { %v512_v17 = vpop.eup %511  ;;  %v400_v19 = vmul.f32 %v510_v16, %v399_v15 }
 0x3d0   :  { %v514_v21 = vpop.eup %513  ;;  %v401_v22 = vmul.f32 %v512_v17, %v399_v15 }
 0x3d1   :  { %v516_v23 = vpop.eup %515  ;;  %v417_v24 = vmul.f32 %v514_v21, %v416_v18 }
 0x3d2   :  { %v418_v25 = vmul.f32 %v516_v23, %v416_v18 }
 0x3d3   :  { %v419_v26 = vadd.f32 %v417_v24, %v400_v19 }
 0x3d4   :  { %v420_v28 = vadd.f32 %v418_v25, %v401_v22 }
 0x3d5   :  { %v425_v29 = vmul.f32 %v424_v27, %v419_v26 }
 0x3d6   :  { %v426_v30 = vmul.f32 %v424_v27, %v420_v28 }
 0x3d7   :  { %427 = vst [vmem:[#allocation2] sm:$0xff] %v425_v29 }
 0x3d8   :  { %428 = vst [vmem:[#allocation2 + $0x8] sm:$0xff] %v426_v30 }
 0x3d9   :  { %528 = shalt.err (!%p525_p4)
}
 0x3da   :  { %s529_s10 = scalar_lea.hbm %s624_s2, 384 }
 0x3db   :  { %p530_p5 = scmp.ne.s32.totalorder %s624_s2, %s529_s10  ;;  %p533_p6 = scmp.lt.u32.totalorder %s529_s10, %s624_s2 }
 0x3dd   :  { %p535_p7 = pnand %p533_p6, %p530_p5 }
 0x3df   :  { %538 = shalt.err (!%p535_p7)
}
 0x3e0   :  { %s547_s15 = smov 128   ;;  %s548_s16 = smov 8  }
 0x3e1   :  { %441 = dma.vmem_to_hbm [thread:$0]  %s436_s6, 384, %s624_s2, [#allocation3], %s547_s15, %s547_s15, %s548_s16  }
 0x3e2   :  { %539 = dma.done.wait [#allocation3], 384  }
 0x3e3   :  { %540 = vsyncadd [#allocation3], 4294966912 }
 0x3e4   :  { %445 = vsyncpa [#allocation3], 1 }

</bundles_post_ra>
